<compile_context>
chip_gen: v6e
topology: v6e:2x2x1
jax: 0.10.0
libtpu: 0.0.40
codegen_flags: <defaults>
</compile_context>

<pallas_src>
import functools

import jax
import jax.numpy as jnp
from jax import lax
from jax.experimental import pallas as pl
from jax.experimental.pallas import tpu as pltpu

NUM_CLASS = 3
EMBED_DIM = 768


def _cdiv(a, b):
    return -(-a // b)


def _round_up(a, m):
    return _cdiv(a, m) * m


# --------------------------------------------------------------------------
# Kernel
# --------------------------------------------------------------------------
def _media_bias_kernel(num_linear, lengths_ref, x_ref, *refs):
    """Grid: axis 0 = article tile (parallel), axis 1 = token tile (reduction).

    refs = (w0, b0, w1, b1, ..., out_ref, acc_ref)
      - w_l: (in_pad, out_pad) f32 (zero-padded), b_l: (1, out_pad)
      - out_ref: (bt, c_pad) logits block (lane-padded classes)
      - acc_ref: (bt, 768) f32 scratch accumulating the masked token sum
    """
    acc_ref = refs[-1]
    out_ref = refs[-2]
    wb = refs[:-2]

    j = pl.program_id(1)                      # token-tile index (innermost)

    @pl.when(j == 0)
    def _():
        acc_ref[...] = jnp.zeros_like(acc_ref)

    x = x_ref[...]                            # (bt, tt, D) f32
    bt, tt = x.shape[0], x.shape[1]
    n_valid = lengths_ref[...]                # (bt, 1) int32

    # Global token indices for this token tile; vectorized padding mask.
    tok = j * tt + lax.broadcasted_iota(jnp.int32, (bt, tt), 1)    # (bt, tt)
    mask = (tok < n_valid).astype(jnp.float32)                      # (bt, tt)

    # Accumulate masked token sum over this tile.
    acc_ref[...] += jnp.sum(x * mask[:, :, None], axis=1)           # (bt, D)

    @pl.when(j == pl.num_programs(1) - 1)
    def _():
        # Masked mean (exact divide; runs once per article tile so cost is nil;
        # length==0 rows guarded — they are padding and sliced away outside).
        n = jnp.maximum(n_valid, 1).astype(jnp.float32)              # (bt, 1)
        h = acc_ref[...] / n                                         # (bt, D)

        # MLP head on lane-padded weights (extra lanes are exact zeros).
        for l in range(num_linear):
            w = wb[2 * l][...]
            b = wb[2 * l + 1][...]
            h = jnp.dot(h, w, preferred_element_type=jnp.float32) + b
            if l < num_linear - 1:            # ReLU after every layer but last
                h = jnp.maximum(h, 0.0)

        out_ref[...] = h                      # full-block, lane-dense store


# --------------------------------------------------------------------------
# Params (matches _init_head: weights ~ N(0,1), biases = 0)
# --------------------------------------------------------------------------
def init_params(key, hidden_dim):
    dims = [EMBED_DIM] + list(hidden_dim) + [NUM_CLASS]
    params = []
    for i in range(len(dims) - 1):
        key, sub = jax.random.split(key)
        w = jax.random.normal(sub, (dims[i], dims[i + 1]), dtype=jnp.float32)
        b = jnp.zeros((1, dims[i + 1]), dtype=jnp.float32)
        params.append((w, b))
    return params


def _pad_params(params):
    """Zero-pad every layer's in/out dims to multiples of 128 (lane-dense)."""
    padded = []
    for w, b in params:
        din, dout = w.shape
        din_p = _round_up(din, 128)
        dout_p = _round_up(dout, 128)
        wp = jnp.zeros((din_p, dout_p), w.dtype).at[:din, :dout].set(w)
        bp = jnp.zeros((1, dout_p), b.dtype).at[:, :dout].set(b)
        padded.append((wp, bp))
    return padded


def _choose_tiles(B, T, D, *, bt_max=128, x_block_bytes=6 << 20):
    """Pick (bt, B_pad, tt, T_pad): article tile up to 128 rows, token tile
    sized so the x block stays ~6 MiB (double-buffered it fits the default
    scoped VMEM on all of v5e/v6e/v7x)."""
    n_b = _cdiv(B, bt_max)
    bt = _round_up(_cdiv(B, n_b), 8)
    B_pad = bt * n_b
    tt_cap = max(8, (x_block_bytes // (bt * D * 4)) // 8 * 8)
    n_t = _cdiv(T, tt_cap)
    tt = _round_up(_cdiv(T, n_t), 8)
    T_pad = tt * n_t
    return bt, B_pad, tt, T_pad


# --------------------------------------------------------------------------
# Wrapper
# --------------------------------------------------------------------------
def media_bias_forward(x, lengths, params, y=None, training=False):
    """x: (B, T, 768) f32 padded token embeddings; lengths: (B,) int32."""
    B, T, D = x.shape
    assert D == EMBED_DIM
    num_linear = len(params)

    padded_params = _pad_params(params)
    c_pad = padded_params[-1][0].shape[1]     # padded class dim (>= 128)

    bt, B_pad, tt, T_pad = _choose_tiles(B, T, D)

    # Pad batch/token axes; padded articles get length 0 (masked + guarded).
    x_p = jnp.pad(x, ((0, B_pad - B), (0, T_pad - T), (0, 0)))
    len_p = jnp.pad(lengths.astype(jnp.int32), (0, B_pad - B)).reshape(B_pad, 1)

    flat = []
    in_specs = [
        pl.BlockSpec((bt, 1), lambda i, j: (i, 0)),          # lengths
        pl.BlockSpec((bt, tt, D), lambda i, j: (i, j, 0)),   # x tile
    ]
    for w, b in padded_params:
        flat.extend([w, b])
        in_specs.append(pl.BlockSpec(w.shape, lambda i, j: (0, 0)))
        in_specs.append(pl.BlockSpec(b.shape, lambda i, j: (0, 0)))

    out = pl.pallas_call(
        functools.partial(_media_bias_kernel, num_linear),
        out_shape=jax.ShapeDtypeStruct((B_pad, c_pad), jnp.float32),
        grid_spec=pltpu.PrefetchScalarGridSpec(
            num_scalar_prefetch=0,
            grid=(B_pad // bt, T_pad // tt),
            in_specs=in_specs,
            out_specs=pl.BlockSpec((bt, c_pad), lambda i, j: (i, 0)),
            scratch_shapes=[pltpu.VMEM((bt, D), jnp.float32)],
        ),
        compiler_params=pltpu.CompilerParams(
            dimension_semantics=("parallel", "arbitrary"),
            vmem_limit_bytes=64 * 1024 * 1024,
        ),
    )(len_p, x_p, *flat)

    logits = out[:B, :NUM_CLASS]

    if not training:
        return logits
    # nn.CrossEntropyLoss(reduction='mean') on the tiny (B, 3) logits — glue.
    logp = jax.nn.log_softmax(logits, axis=-1)
    return -jnp.mean(jnp.take_along_axis(logp, y[:, None], axis=-1))


# Pure-JAX reference (same math, no kernel) for a sanity check.
def _media_bias_reference(x, lengths, params):
    B, T, D = x.shape
    tok = jnp.arange(T)[None, :, None]
    mask = (tok < lengths[:, None, None]).astype(jnp.float32)
    pooled = jnp.sum(x * mask, axis=1) / jnp.maximum(lengths, 1).astype(
        jnp.float32)[:, None]
    h = pooled
    for l, (w, b) in enumerate(params):
        h = h @ w + b
        if l < len(params) - 1:
            h = jnp.maximum(h, 0.0)
    return h


if __name__ == "__main__":
    key = jax.random.PRNGKey(0)
    B, T = 2, 8
    hidden_dim = [32]

    k_x, k_p = jax.random.split(key)
    x = jax.random.normal(k_x, (B, T, EMBED_DIM), dtype=jnp.float32)
    lengths = jnp.array([5, 8], dtype=jnp.int32)   # valid (non-pad) tokens/article
    params = init_params(k_p, hidden_dim)

    # eval-mode forward: stacked predictions (B, 3)
    logits = media_bias_forward(x, lengths, params, training=False)
    jax.block_until_ready(logits)
    assert logits.shape == (B, NUM_CLASS)

    # sanity check against the pure-JAX reference
    ref = _media_bias_reference(x, lengths, params)
    assert jnp.allclose(logits, ref, rtol=2e-2, atol=2e-2), (logits, ref)

    # training-mode forward: scalar CE loss
    y = jnp.array([0, 2], dtype=jnp.int32)
    loss = media_bias_forward(x, lengths, params, y=y, training=True)
    jax.block_until_ready(loss)
    assert loss.shape == ()

    print("KERNEL_OK")
</pallas_src>

<mosaic_0001>
module attributes {stable_mosaic.version = 11 : i64} {
  func.func @_media_bias_kernel(%arg0: i32, %arg1: i32, %arg2: memref<8x1xi32, #tpu.memory_space<vmem>>, %arg3: memref<8x8x768xf32, #tpu.memory_space<vmem>>, %arg4: memref<768x128xf32, #tpu.memory_space<vmem>>, %arg5: memref<1x128xf32, #tpu.memory_space<vmem>>, %arg6: memref<128x128xf32, #tpu.memory_space<vmem>>, %arg7: memref<1x128xf32, #tpu.memory_space<vmem>>, %arg8: memref<8x128xf32, #tpu.memory_space<vmem>>, %arg9: memref<8x768xf32, #tpu.memory_space<vmem>>) attributes {dimension_semantics = [#tpu.dimension_semantics<parallel>, #tpu.dimension_semantics<arbitrary>], iteration_bounds = array<i64: 1, 1>, scalar_prefetch = 0 : i64, scratch_operands = 1 : i64, tpu.core_type = #tpu.core_type<tc>, window_params = [{transform_indices = @transform_0, window_bounds = array<i64: 8, 1>}, {transform_indices = @transform_1, window_bounds = array<i64: 8, 8, 768>}, {pipeline_mode = #tpu.pipeline_mode<synchronous>, transform_indices = @transform_2, window_bounds = array<i64: 768, 128>}, {pipeline_mode = #tpu.pipeline_mode<synchronous>, transform_indices = @transform_3, window_bounds = array<i64: 1, 128>}, {pipeline_mode = #tpu.pipeline_mode<synchronous>, transform_indices = @transform_4, window_bounds = array<i64: 128, 128>}, {pipeline_mode = #tpu.pipeline_mode<synchronous>, transform_indices = @transform_5, window_bounds = array<i64: 1, 128>}, {transform_indices = @transform_6, window_bounds = array<i64: 8, 128>}]} {
    %c0_i32 = arith.constant 0 : i32
    %0 = arith.cmpi eq, %arg1, %c0_i32 : i32
    %1 = arith.extui %0 : i1 to i32
    %c0_i32_0 = arith.constant 0 : i32
    %2 = arith.cmpi ne, %1, %c0_i32_0 : i32
    scf.if %2 {
      %cst_11 = arith.constant 0.000000e+00 : f32
      %23 = vector.broadcast %cst_11 : f32 to vector<8x768xf32>
      %c0_12 = arith.constant 0 : index
      %c0_13 = arith.constant 0 : index
      %24 = vector.load %arg9[%c0_12, %c0_13] : memref<8x768xf32, #tpu.memory_space<vmem>>, vector<8x768xf32>
      tpu.vector_store %arg9[%c0_12, %c0_13], %23 {strides = array<i32>} : memref<8x768xf32, #tpu.memory_space<vmem>>, vector<8x768xf32>,
    } else {
    }
    %c0 = arith.constant 0 : index
    %c0_1 = arith.constant 0 : index
    %c0_2 = arith.constant 0 : index
    %3 = vector.load %arg3[%c0, %c0_1, %c0_2] : memref<8x8x768xf32, #tpu.memory_space<vmem>>, vector<8x8x768xf32>
    %c0_3 = arith.constant 0 : index
    %c0_4 = arith.constant 0 : index
    %4 = vector.load %arg2[%c0_3, %c0_4] : memref<8x1xi32, #tpu.memory_space<vmem>>, vector<8x1xi32>
    %c8_i32 = arith.constant 8 : i32
    %5 = arith.muli %arg1, %c8_i32 : i32
    %6 = tpu.iota {dimensions = array<i32: 1>} : vector<8x8xi32>
    %7 = vector.broadcast %5 : i32 to vector<8x8xi32>
    %8 = arith.addi %7, %6 : vector<8x8xi32>
    %9 = vector.broadcast %4 : vector<8x1xi32> to vector<8x8xi32>
    %10 = arith.cmpi slt, %8, %9 : vector<8x8xi32>
    %11 = arith.extui %10 : vector<8x8xi1> to vector<8x8xi32>
    %12 = arith.sitofp %11 : vector<8x8xi32> to vector<8x8xf32>
    %c0_5 = arith.constant 0 : index
    %c0_6 = arith.constant 0 : index
    %13 = vector.load %arg9[%c0_5, %c0_6] : memref<8x768xf32, #tpu.memory_space<vmem>>, vector<8x768xf32>
    %14 = vector.shape_cast %12 : vector<8x8xf32> to vector<8x8x1xf32>
    %15 = vector.broadcast %14 : vector<8x8x1xf32> to vector<8x8x768xf32>
    %16 = arith.mulf %3, %15 : vector<8x8x768xf32>
    %cst = arith.constant dense<0.000000e+00> : vector<8x768xf32>
    %17 = vector.multi_reduction <add>, %16, %cst [1] : vector<8x8x768xf32> to vector<8x768xf32>
    %18 = arith.addf %13, %17 : vector<8x768xf32>
    %c0_7 = arith.constant 0 : index
    %c0_8 = arith.constant 0 : index
    %19 = vector.load %arg9[%c0_7, %c0_8] : memref<8x768xf32, #tpu.memory_space<vmem>>, vector<8x768xf32>
    tpu.vector_store %arg9[%c0_7, %c0_8], %18 {strides = array<i32>} : memref<8x768xf32, #tpu.memory_space<vmem>>, vector<8x768xf32>,
    %c0_i32_9 = arith.constant 0 : i32
    %20 = arith.cmpi eq, %arg1, %c0_i32_9 : i32
    %21 = arith.extui %20 : i1 to i32
    %c0_i32_10 = arith.constant 0 : i32
    %22 = arith.cmpi ne, %21, %c0_i32_10 : i32
    scf.if %22 {
      %c1_i32 = arith.constant 1 : i32
      %23 = vector.broadcast %c1_i32 : i32 to vector<8x1xi32>
      %24 = arith.maxsi %4, %23 : vector<8x1xi32>
      %25 = arith.sitofp %24 : vector<8x1xi32> to vector<8x1xf32>
      %c0_11 = arith.constant 0 : index
      %c0_12 = arith.constant 0 : index
      %26 = vector.load %arg9[%c0_11, %c0_12] : memref<8x768xf32, #tpu.memory_space<vmem>>, vector<8x768xf32>
      %27 = vector.broadcast %25 : vector<8x1xf32> to vector<8x768xf32>
      %28 = arith.divf %26, %27 : vector<8x768xf32>
      %c0_13 = arith.constant 0 : index
      %c0_14 = arith.constant 0 : index
      %29 = vector.load %arg4[%c0_13, %c0_14] : memref<768x128xf32, #tpu.memory_space<vmem>>, vector<768x128xf32>
      %c0_15 = arith.constant 0 : index
      %c0_16 = arith.constant 0 : index
      %30 = vector.load %arg5[%c0_15, %c0_16] : memref<1x128xf32, #tpu.memory_space<vmem>>, vector<1x128xf32>
      %cst_17 = arith.constant dense<0.000000e+00> : vector<8x128xf32>
      %31 = tpu.matmul %28, %29, %cst_17 {dimension_numbers = #tpu.dot_dimension_numbers<[1], [0], [0], [1], [0, 0, 1, 1], [], []>} : vector<8x768xf32>, vector<768x128xf32>, vector<8x128xf32> -> vector<8x128xf32>
      %32 = vector.broadcast %30 : vector<1x128xf32> to vector<8x128xf32>
      %33 = arith.addf %31, %32 : vector<8x128xf32>
      %cst_18 = arith.constant 0.000000e+00 : f32
      %34 = vector.broadcast %cst_18 : f32 to vector<8x128xf32>
      %35 = arith.maximumf %33, %34 : vector<8x128xf32>
      %c0_19 = arith.constant 0 : index
      %c0_20 = arith.constant 0 : index
      %36 = vector.load %arg6[%c0_19, %c0_20] : memref<128x128xf32, #tpu.memory_space<vmem>>, vector<128x128xf32>
      %c0_21 = arith.constant 0 : index
      %c0_22 = arith.constant 0 : index
      %37 = vector.load %arg7[%c0_21, %c0_22] : memref<1x128xf32, #tpu.memory_space<vmem>>, vector<1x128xf32>
      %cst_23 = arith.constant dense<0.000000e+00> : vector<8x128xf32>
      %38 = tpu.matmul %35, %36, %cst_23 {dimension_numbers = #tpu.dot_dimension_numbers<[1], [0], [0], [1], [0, 0, 1, 1], [], []>} : vector<8x128xf32>, vector<128x128xf32>, vector<8x128xf32> -> vector<8x128xf32>
      %39 = vector.broadcast %37 : vector<1x128xf32> to vector<8x128xf32>
      %40 = arith.addf %38, %39 : vector<8x128xf32>
      %c0_24 = arith.constant 0 : index
      %c0_25 = arith.constant 0 : index
      %41 = vector.load %arg8[%c0_24, %c0_25] : memref<8x128xf32, #tpu.memory_space<vmem>>, vector<8x128xf32>
      tpu.vector_store %arg8[%c0_24, %c0_25], %40 {strides = array<i32>} : memref<8x128xf32, #tpu.memory_space<vmem>>, vector<8x128xf32>,
    } else {
    }
    return
  }
  func.func @transform_0(%arg0: i32, %arg1: i32) -> (i32, i32) {
    %c0_i32 = arith.constant 0 : i32
    %c0_i32_0 = arith.constant 0 : i32
    return %arg0, %c0_i32 : i32, i32
  }
  func.func @transform_1(%arg0: i32, %arg1: i32) -> (i32, i32, i32) {
    %c0_i32 = arith.constant 0 : i32
    %c0_i32_0 = arith.constant 0 : i32
    return %arg0, %arg1, %c0_i32 : i32, i32, i32
  }
  func.func @transform_2(%arg0: i32, %arg1: i32) -> (i32, i32) {
    %c0_i32 = arith.constant 0 : i32
    %c0_i32_0 = arith.constant 0 : i32
    %c0_i32_1 = arith.constant 0 : i32
    return %c0_i32, %c0_i32_0 : i32, i32
  }
  func.func @transform_3(%arg0: i32, %arg1: i32) -> (i32, i32) {
    %c0_i32 = arith.constant 0 : i32
    %c0_i32_0 = arith.constant 0 : i32
    %c0_i32_1 = arith.constant 0 : i32
    return %c0_i32, %c0_i32_0 : i32, i32
  }
  func.func @transform_4(%arg0: i32, %arg1: i32) -> (i32, i32) {
    %c0_i32 = arith.constant 0 : i32
    %c0_i32_0 = arith.constant 0 : i32
    %c0_i32_1 = arith.constant 0 : i32
    return %c0_i32, %c0_i32_0 : i32, i32
  }
  func.func @transform_5(%arg0: i32, %arg1: i32) -> (i32, i32) {
    %c0_i32 = arith.constant 0 : i32
    %c0_i32_0 = arith.constant 0 : i32
    %c0_i32_1 = arith.constant 0 : i32
    return %c0_i32, %c0_i32_0 : i32, i32
  }
  func.func @transform_6(%arg0: i32, %arg1: i32) -> (i32, i32) {
    %c0_i32 = arith.constant 0 : i32
    %c0_i32_0 = arith.constant 0 : i32
    return %arg0, %c0_i32 : i32, i32
  }
}

</mosaic_0001>

<bundles_post_ra>
// kernel: tpu_custom_call.1
= control target key start
LH: loop header
LB: loop body
LE: loop exit
PB: predicated region body
PF: predicated region fallthrough
CT: control target
= control target key end

     0   :  { %11 = vsyncpa [#allocation4], 0  ;;  %s1694_s0 = inlined_call_operand.vmem [shape: s32[8,1], index: 0, kind: input, shape index: {}]   ;;  %s1695_s1 = inlined_call_operand.hbm [shape: f32[8,8,768], index: 1, kind: input, shape index: {}]   ;;  %s1696_s2 = inlined_call_operand.hbm [shape: f32[768,128], index: 2, kind: input, shape index: {}]   ;;  %s1697_s3 = inlined_call_operand.vmem [shape: f32[1,128], index: 3, kind: input, shape index: {}]   ;;  %s1698_s4 = inlined_call_operand.hbm [shape: f32[128,128], index: 4, kind: input, shape index: {}]   ;;  %s1699_s5 = inlined_call_operand.vmem [shape: f32[1,128], index: 5, kind: input, shape index: {}]   ;;  %s1700_s6 = inlined_call_operand.hbm [shape: f32[8,128], index: 6, kind: output, shape index: {}]  }
   0x1   :  { %12 = vsyncpa [#allocation7], 0 }
   0x2   :  { %13 = vsyncpa [#allocation5], 0  ;;  %s1357_s21 = smov [#allocation6]  }
   0x3   :  { %s33_s22 = sshll.u32 %s1357_s21, 4  ;;  %s34_s22 = int_to_ptr.vmem [resolvable:$true] %s33_s22 }
   0x4   :  { %s1279_s23 = scalar_lea.vmem %s34_s22, 12288  ;;  %p1284_p1 = scmp.lt.s32.totalorder %s34_s22, %s34_s22 }
   0x5   :  { %p1280_p0 = scmp.ne.s32.totalorder %s34_s22, %s1279_s23  ;;  %p1285_p2 = scmp.lt.s32.totalorder %s1279_s23, %s1279_s23 }
   0x7   :  { %p1286_p3 = por %p1285_p2, %p1284_p1 }
   0x9   :  { %p1287_p4 = pnand %p1286_p3, %p1280_p0 }
   0xb   :  { %1290 = shalt.err (!%p1287_p4)
}
   0xc   :  { %s1358_s24 = smov 128   ;;  %s1359_s25 = smov 8  }
   0xd   :  { %39 = dma.hbm_to_vmem [thread:$0]  %s1696_s2, 12288, %s34_s22, [#allocation7], %s1358_s24, %s1358_s24, %s1359_s25  }
   0xe   :  { %s1360_s28 = smov [#allocation3]  }
   0xf   :  { %s21_s29 = sshll.u32 %s1360_s28, 4  ;;  %s22_s29 = int_to_ptr.vmem [resolvable:$true] %s21_s29 }
  0x10   :  { %s1299_s30 = scalar_lea.vmem %s22_s29, 6144  ;;  %p1304_p6 = scmp.lt.s32.totalorder %s22_s29, %s22_s29 }
  0x11   :  { %p1300_p5 = scmp.ne.s32.totalorder %s22_s29, %s1299_s30  ;;  %p1305_p7 = scmp.lt.s32.totalorder %s1299_s30, %s1299_s30 }
  0x13   :  { %p1306_p8 = por %p1305_p7, %p1304_p6 }
  0x15   :  { %p1307_p9 = pnand %p1306_p8, %p1300_p5 }
  0x17   :  { %1310 = shalt.err (!%p1307_p9)
}
  0x18   :  { %s1361_s7 = smov 768   ;;  %s1362_s8 = smov 48  }
  0x19   :  { %27 = dma.hbm_to_vmem [thread:$0]  %s1695_s1, 6144, %s22_s29, [#allocation4], %s1361_s7, %s1361_s7, %s1362_s8  }
  0x1a   :  { %s1363_s11 = smov [#allocation8]  }
  0x1b   :  { %s47_s12 = sshll.u32 %s1363_s11, 4  ;;  %s48_s12 = int_to_ptr.vmem [resolvable:$true] %s47_s12 }
  0x1c   :  { %s1319_s2 = scalar_lea.vmem %s48_s12, 2048  ;;  %p1324_p11 = scmp.lt.s32.totalorder %s48_s12, %s48_s12 }
  0x1d   :  { %p1320_p10 = scmp.ne.s32.totalorder %s48_s12, %s1319_s2  ;;  %p1325_p12 = scmp.lt.s32.totalorder %s1319_s2, %s1319_s2 }
  0x1f   :  { %p1326_p13 = por %p1325_p12, %p1324_p11 }
  0x21   :  { %p1327_p0 = pnand %p1326_p13, %p1320_p10 }
  0x23   :  { %1330 = shalt.err (!%p1327_p0)
}
  0x24   :  { %53 = dma.hbm_to_vmem [thread:$0]  %s1698_s4, 2048, %s48_s12, [#allocation7], %s1358_s24, %s1358_s24, %s1359_s25  }
  0x25   :  { %1351 = dma.done.wait [#allocation4], 6144  }
  0x26   :  { %1352 = vsyncadd [#allocation4], 4294961152 }
  0x27   :  { %1353 = dma.done.wait [#allocation7], 14336  }
  0x28   :  { %1354 = vsyncadd [#allocation7], 4294952960  ;;  %v1364_v0 = vmov 0   ;;  %v123_v1 = vld [vmem:[%s1694_s0] sm:$0xff]  ;;  %v703_v4 = vld [vmem:[#allocation6 + $0xf8] sm:$0xff]  ;;  %v125_v7 = vlaneseq  ;;  %v1701_v13 = vmov 0.0  }
  0x29   :  { %1267 = vset.pattern.permute.xlu0 %v1364_v0  ;;  %1268 = vset.pattern.permute.xlu1 %v1364_v0  ;;  %vm651_vm0 = vcmp.gt.s32.totalorder %v123_v1, 1  ;;  %v687_v5 = vld [vmem:[#allocation6 + $0x78] sm:$0xff]  ;;  %v702_v19 = vld [vmem:[#allocation6 + $0xf0] sm:$0xff]  ;;  %v701_v23 = vld [vmem:[#allocation6 + $0xe8] sm:$0xff]  ;;  %vm581_vm2 = vcmask 1041409   ;;  %vm583_vm3 = vcmask 1042434  }
  0x2a   :  { %130 = vperm.xlu0 %1267, %v123_v1   ;;  %v652_v2 = vsel %vm651_vm0, %v123_v1, 1  ;;  %v735_v6 = vld [vmem:[#allocation6 + $0x1f8] sm:$0xff]  ;;  %1099 = vmatprep.subr.mxu0 %v703_v4  ;;  %v142_v8 = vshrl.u32 %v125_v7, 7  ;;  %v126_v9 = vand.u32 127, %v125_v7  ;;  %v686_v21 = vld [vmem:[#allocation6 + $0x70] sm:$0xff]  ;;  %v685_v25 = vld [vmem:[#allocation6 + $0x68] sm:$0xff] }
  0x2b   :  { %v653_v3 = vcvt.s32.f32 %v652_v2  ;;  %1134 = vmatprep.subr.mxu1 %v735_v6  ;;  %1100 = vmatpush3.msra.mxu0 %v687_v5  ;;  %v719_v20 = vld [vmem:[#allocation6 + $0x178] sm:$0xff]  ;;  %v734_v22 = vld [vmem:[#allocation6 + $0x1f0] sm:$0xff]  ;;  %v733_v30 = vld [vmem:[#allocation6 + $0x1e8] sm:$0xff]  ;;  %vm585_vm4 = vcmask 1043459   ;;  %vm587_vm5 = vcmask 1044484   ;;  %vm589_vm6 = vcmask 1045509  }
  0x2c   :  { %v143_v10 = vsub.s32 0, %v142_v8  ;;  %v150_v11 = vsub.s32 1, %v142_v8  ;;  %v164_v17 = vsub.s32 3, %v142_v8  ;;  %v157_v18 = vsub.s32 2, %v142_v8  ;;  %1101 = vmatprep.subr.mxu0 %v702_v19  ;;  %v718_v24 = vld [vmem:[#allocation6 + $0x170] sm:$0xff]  ;;  %1135 = vmatpush3.msra.mxu1 %v719_v20  ;;  %v700_v37 = vld [vmem:[#allocation6 + $0xe0] sm:$0xff] }
  0x2d   :  { %662 = vperm.xlu1 %1268, %v653_v3   ;;  %1102 = vmatpush3.msra.mxu0 %v686_v21  ;;  %v171_v28 = vsub.s32 4, %v142_v8  ;;  %v178_v29 = vsub.s32 5, %v142_v8  ;;  %v185_v33 = vsub.s32 6, %v142_v8  ;;  %v192_v34 = vsub.s32 7, %v142_v8  ;;  %v717_v38 = vld [vmem:[#allocation6 + $0x168] sm:$0xff]  ;;  %v684_v39 = vld [vmem:[#allocation6 + $0x60] sm:$0xff] }
  0x2e   :  { %1136 = vmatprep.subr.mxu1 %v734_v22  ;;  %1103 = vmatprep.subr.mxu0 %v701_v23  ;;  %v732_v40 = vld [vmem:[#allocation6 + $0x1e0] sm:$0xff]  ;;  %v699_v41 = vld [vmem:[#allocation6 + $0xd8] sm:$0xff]  ;;  %v698_v45 = vld [vmem:[#allocation6 + $0xd0] sm:$0xff]  ;;  %vm591_vm7 = vcmask 1046534   ;;  %vm593_vm8 = vcmask 1047559   ;;  %vm1366_vm9 = vmmov 0  }
  0x2f   :  { %1137 = vmatpush3.msra.mxu1 %v718_v24  ;;  %1104 = vmatpush3.msra.mxu0 %v685_v25  ;;  %v716_v42 = vld [vmem:[#allocation6 + $0x160] sm:$0xff]  ;;  %v683_v43 = vld [vmem:[#allocation6 + $0x58] sm:$0xff]  ;;  %v682_v47 = vld [vmem:[#allocation6 + $0x50] sm:$0xff]  ;;  %s1367_s18 = smov [#allocation9]  }
  0x30   :  { %1138 = vmatprep.subr.mxu1 %v733_v30  ;;  %1105 = vmatprep.subr.mxu0 %v700_v37  ;;  %v731_v44 = vld [vmem:[#allocation6 + $0x1d8] sm:$0xff]  ;;  %v730_v48 = vld [vmem:[#allocation6 + $0x1d0] sm:$0xff]  ;;  %v697_v49 = vld [vmem:[#allocation6 + $0xc8] sm:$0xff]  ;;  %s1086_s19 = sshll.u32 %s1367_s18, 4  ;;  %s1087_s19 = int_to_ptr.vmem [resolvable:$true] %s1086_s19 }
  0x31   :  { %1139 = vmatpush3.msra.mxu1 %v717_v38  ;;  %1106 = vmatpush3.msra.mxu0 %v684_v39  ;;  %v715_v46 = vld [vmem:[#allocation6 + $0x158] sm:$0xff]  ;;  %v714_v50 = vld [vmem:[#allocation6 + $0x150] sm:$0xff]  ;;  %v681_v51 = vld [vmem:[#allocation6 + $0x48] sm:$0xff]  ;;  %p1336_p2 = scmp.lt.s32.totalorder %s1087_s19, %s1087_s19 }
  0x32   :  { %1140 = vmatprep.subr.mxu1 %v732_v40  ;;  %1107 = vmatprep.subr.mxu0 %v699_v41  ;;  %v729_v52 = vld [vmem:[#allocation6 + $0x1c8] sm:$0xff]  ;;  %v696_v53 = vld [vmem:[#allocation6 + $0xc0] sm:$0xff]  ;;  %v695_v57 = vld [vmem:[#allocation6 + $0xb8] sm:$0xff] }
  0x33   :  { %1141 = vmatpush3.msra.mxu1 %v716_v42  ;;  %1108 = vmatpush3.msra.mxu0 %v683_v43  ;;  %v713_v54 = vld [vmem:[#allocation6 + $0x148] sm:$0xff]  ;;  %v680_v55 = vld [vmem:[#allocation6 + $0x40] sm:$0xff]  ;;  %v679_v59 = vld [vmem:[#allocation6 + $0x38] sm:$0xff] }
  0x34   :  { %1142 = vmatprep.subr.mxu1 %v731_v44  ;;  %1109 = vmatprep.subr.mxu0 %v698_v45  ;;  %v728_v56 = vld [vmem:[#allocation6 + $0x1c0] sm:$0xff]  ;;  %v727_v60 = vld [vmem:[#allocation6 + $0x1b8] sm:$0xff]  ;;  %v694_v61 = vld [vmem:[#allocation6 + $0xb0] sm:$0xff] }
  0x35   :  { %1143 = vmatpush3.msra.mxu1 %v715_v46  ;;  %1110 = vmatpush3.msra.mxu0 %v682_v47  ;;  %v712_v58 = vld [vmem:[#allocation6 + $0x140] sm:$0xff]  ;;  %v711_v62 = vld [vmem:[#allocation6 + $0x138] sm:$0xff]  ;;  %v678_v63 = vld [vmem:[#allocation6 + $0x30] sm:$0xff] }
  0x36   :  { %1144 = vmatprep.subr.mxu1 %v730_v48  ;;  %1111 = vmatprep.subr.mxu0 %v697_v49  ;;  %v726_v0 = vld [vmem:[#allocation6 + $0x1b0] sm:$0xff]  ;;  %v693_v1 = vld [vmem:[#allocation6 + $0xa8] sm:$0xff]  ;;  %v692_v5 = vld [vmem:[#allocation6 + $0xa0] sm:$0xff] }
  0x37   :  { %1145 = vmatpush3.msra.mxu1 %v714_v50  ;;  %1112 = vmatpush3.msra.mxu0 %v681_v51  ;;  %v710_v2 = vld [vmem:[#allocation6 + $0x130] sm:$0xff]  ;;  %v677_v3 = vld [vmem:[#allocation6 + $0x28] sm:$0xff]  ;;  %v676_v7 = vld [vmem:[#allocation6 + $0x20] sm:$0xff] }
  0x38   :  { %1146 = vmatprep.subr.mxu1 %v729_v52  ;;  %1113 = vmatprep.subr.mxu0 %v696_v53  ;;  %v725_v4 = vld [vmem:[#allocation6 + $0x1a8] sm:$0xff]  ;;  %v724_v8 = vld [vmem:[#allocation6 + $0x1a0] sm:$0xff]  ;;  %v706_v19 = vld [vmem:[#allocation6 + $0x110] sm:$0xff] }
  0x39   :  { %1147 = vmatpush3.msra.mxu1 %v713_v54  ;;  %1114 = vmatpush3.msra.mxu0 %v680_v55  ;;  %v709_v6 = vld [vmem:[#allocation6 + $0x128] sm:$0xff]  ;;  %v688_v22 = vld [vmem:[#allocation6 + $0x80] sm:$0xff]  ;;  %v81_v44 = vld [vmem:[#allocation3 + $0x30] sm:$0xff] }
  0x3a   :  { %1148 = vmatprep.subr.mxu1 %v728_v56  ;;  %1115 = vmatprep.subr.mxu0 %v695_v57  ;;  %v673_v20 = vld [vmem:[#allocation6 + $0x8] sm:$0xff]  ;;  %v672_v24 = vld [vmem:[#allocation6] sm:$0xff]  ;;  %v82_v45 = vld [vmem:[#allocation3 + $0x38] sm:$0xff] }
  0x3b   :  { %1149 = vmatpush3.msra.mxu1 %v712_v58  ;;  %1116 = vmatpush3.msra.mxu0 %v679_v59  ;;  %v721_v21 = vld [vmem:[#allocation6 + $0x188] sm:$0xff]  ;;  %v720_v25 = vld [vmem:[#allocation6 + $0x180] sm:$0xff]  ;;  %v86_v59 = vld [vmem:[#allocation3 + $0x58] sm:$0xff] }
  0x3c   :  { %1150 = vmatprep.subr.mxu1 %v727_v60  ;;  %1117 = vmatprep.subr.mxu0 %v694_v61  ;;  %v705_v23 = vld [vmem:[#allocation6 + $0x108] sm:$0xff]  ;;  %v79_v37 = vld [vmem:[#allocation3 + $0x20] sm:$0xff] }
  0x3d   :  { %1151 = vmatpush3.msra.mxu1 %v711_v62  ;;  %1118 = vmatpush3.msra.mxu0 %v678_v63  ;;  %v76_v30 = vld [vmem:[#allocation3 + $0x8] sm:$0xff]  ;;  %v83_v55 = vld [vmem:[#allocation3 + $0x40] sm:$0xff] }
  0x3e   :  { %1152 = vmatprep.subr.mxu1 %v726_v0  ;;  %1119 = vmatprep.subr.mxu0 %v693_v1  ;;  %v84_v58 = vld [vmem:[#allocation3 + $0x48] sm:$0xff] }
  0x3f   :  { %1153 = vmatpush3.msra.mxu1 %v710_v2  ;;  %1120 = vmatpush3.msra.mxu0 %v677_v3 }
  0x40   :  { %1154 = vmatprep.subr.mxu1 %v725_v4  ;;  %1121 = vmatprep.subr.mxu0 %v692_v5 }
  0x41   :  { %1155 = vmatpush3.msra.mxu1 %v709_v6  ;;  %1122 = vmatpush3.msra.mxu0 %v676_v7 }
  0x42   :  { %1156 = vmatprep.subr.mxu1 %v724_v8 }
  0xa5   :  { %v131_v12 = vpop.permute.xlu0 %130 }
  0xa6   :  { %vm132_vm1 = vcmp.lt.s32.totalorder %v126_v9, %v131_v12  ;;  %v691_v9 = vld [vmem:[#allocation6 + $0x98] sm:$0xff] }
  0xa7   :  { %v1096_v14 = vsel %vm132_vm1, 1.0, %v1701_v13  ;;  %1123 = vmatprep.subr.mxu0 %v691_v9  ;;  %v723_v12 = vld [vmem:[#allocation6 + $0x198] sm:$0xff] }
  0xa8   :  { %v144_v15 = vrot.slane %v1096_v14, %v143_v10  ;;  %v151_v16 = vrot.slane %v1096_v14, %v150_v11  ;;  %v165_v26 = vrot.slane %v1096_v14, %v164_v17  ;;  %v158_v27 = vrot.slane %v1096_v14, %v157_v18  ;;  %v708_v10 = vld [vmem:[#allocation6 + $0x120] sm:$0xff]  ;;  %v675_v11 = vld [vmem:[#allocation6 + $0x18] sm:$0xff]  ;;  %v722_v17 = vld [vmem:[#allocation6 + $0x190] sm:$0xff] }
  0xa9   :  { %v172_v31 = vrot.slane %v1096_v14, %v171_v28  ;;  %v179_v32 = vrot.slane %v1096_v14, %v178_v29  ;;  %v186_v35 = vrot.slane %v1096_v14, %v185_v33  ;;  %v193_v36 = vrot.slane %v1096_v14, %v192_v34  ;;  %1157 = vmatpush3.msra.mxu1 %v708_v10  ;;  %v690_v14 = vld [vmem:[#allocation6 + $0x90] sm:$0xff]  ;;  %v689_v18 = vld [vmem:[#allocation6 + $0x88] sm:$0xff]  ;;  %v663_v28 = vpop.permute.xlu1 %662  ;;  %v75_v29 = vld [vmem:[#allocation3] sm:$0xff] }
  0xaa   :  { %146 = vbcast.lane.b32.xlu0 %v144_v15, 256  ;;  %153 = vbcast.lane.b32.xlu1 %v151_v16, 256  ;;  %v707_v15 = vld [vmem:[#allocation6 + $0x118] sm:$0xff]  ;;  %v674_v16 = vld [vmem:[#allocation6 + $0x10] sm:$0xff]  ;;  %v80_v34 = vld [vmem:[#allocation3 + $0x28] sm:$0xff]  ;;  %1269 = vrcp.f32 %v663_v28 }
  0xab   :  { %1124 = vmatpush3.msra.mxu0 %v675_v11  ;;  %1158 = vmatprep.subr.mxu1 %v723_v12  ;;  %v93_v12 = vld [vmem:[#allocation3 + $0x90] sm:$0xff] }
  0xac   :  { %1125 = vmatprep.subr.mxu0 %v690_v14  ;;  %1159 = vmatpush3.msra.mxu1 %v707_v15 }
  0xad   :  { %1126 = vmatpush3.msra.mxu0 %v674_v16  ;;  %1160 = vmatprep.subr.mxu1 %v722_v17  ;;  %v85_v17 = vld [vmem:[#allocation3 + $0x50] sm:$0xff] }
  0xae   :  { %167 = vbcast.lane.b32.xlu0 %v165_v26, 256  ;;  %160 = vbcast.lane.b32.xlu1 %v158_v27, 256  ;;  %v704_v26 = vld [vmem:[#allocation6 + $0x100] sm:$0xff]  ;;  %v767_v27 = vld [vmem:[#allocation6 + $0x2f8] sm:$0xff] }
  0xaf   :  { %1127 = vmatprep.subr.mxu0 %v689_v18  ;;  %1161 = vmatpush3.msra.mxu1 %v706_v19 }
  0xb0   :  { %1128 = vmatpush3.msra.mxu0 %v673_v20  ;;  %1162 = vmatprep.subr.mxu1 %v721_v21  ;;  %v95_v20 = vld [vmem:[#allocation3 + $0xa0] sm:$0xff] }
  0xb1   :  { %1129 = vmatprep.subr.mxu0 %v688_v22  ;;  %1163 = vmatpush3.msra.mxu1 %v705_v23  ;;  %v94_v23 = vld [vmem:[#allocation3 + $0x98] sm:$0xff] }
  0xb2   :  { %174 = vbcast.lane.b32.xlu0 %v172_v31, 256  ;;  %181 = vbcast.lane.b32.xlu1 %v179_v32, 256  ;;  %v77_v31 = vld [vmem:[#allocation3 + $0x10] sm:$0xff]  ;;  %v78_v32 = vld [vmem:[#allocation3 + $0x18] sm:$0xff] }
  0xb3   :  { %1130 = vmatpush3.msra.mxu0 %v672_v24  ;;  %1164 = vmatprep.subr.mxu1 %v720_v25 }
  0xb4   :  { %1165 = vmatpush3.msra.mxu1 %v704_v26  ;;  %1169 = vmatprep.subr.mxu0 %v767_v27 }
  0xb5   :  { %1221 = vmatprep.subr.mxu1 %v1701_v13 }
  0xb6   :  { %188 = vbcast.lane.b32.xlu0 %v186_v35, 256  ;;  %195 = vbcast.lane.b32.xlu1 %v193_v36, 256 }
 0x11c   :  { %v147_v33 = vpop.permute.xlu0 %146  ;;  %v154_v43 = vpop.permute.xlu1 %153 }
 0x11d   :  { %v197_v35 = vmul.f32 %v147_v33, %v75_v29  ;;  %v198_v36 = vmul.f32 %v147_v33, %v76_v30  ;;  %v199_v38 = vmul.f32 %v147_v33, %v77_v31  ;;  %v200_v39 = vmul.f32 %v147_v33, %v78_v32  ;;  %v96_v30 = vld [vmem:[#allocation3 + $0xa8] sm:$0xff] }
 0x11e   :  { %v202_v40 = vmul.f32 %v147_v33, %v80_v34  ;;  %v201_v46 = vmul.f32 %v147_v33, %v79_v37  ;;  %v203_v51 = vmul.f32 %v154_v43, %v81_v44  ;;  %v204_v52 = vmul.f32 %v154_v43, %v82_v45 }
 0x11f   :  { %v245_v41 = vrot.slane %v197_v35, 4  ;;  %v251_v42 = vrot.slane %v198_v36, 4  ;;  %v257_v47 = vrot.slane %v199_v38, 4  ;;  %v263_v48 = vrot.slane %v200_v39, 4 }
 0x120   :  { %v275_v50 = vrot.slane %v202_v40, 4  ;;  %v269_v54 = vrot.slane %v201_v46, 4  ;;  %v281_v62 = vrot.slane %v203_v51, 4  ;;  %v287_v63 = vrot.slane %v204_v52, 4  ;;  %v1417_v11 = vpop.permute.xlu0 %167 }
 0x121   :  { %v246_v49 = vadd.f32 %v245_v41, %v197_v35  ;;  %v252_v53 = vadd.f32 %v251_v42, %v198_v36  ;;  %v258_v56 = vadd.f32 %v257_v47, %v199_v38  ;;  %v264_v57 = vadd.f32 %v263_v48, %v200_v39 }
 0x122   :  { %v276_v61 = vadd.f32 %v275_v50, %v202_v40  ;;  %v205_v1 = vmul.f32 %v154_v43, %v83_v55  ;;  %v270_v2 = vadd.f32 %v269_v54, %v201_v46  ;;  %v206_v3 = vmul.f32 %v154_v43, %v84_v58  ;;  %v98_v40 = vld [vmem:[#allocation3 + $0xb8] sm:$0xff] }
 0x123   :  { %v247_v60 = vrot.slane %v246_v49, 2  ;;  %v253_v0 = vrot.slane %v252_v53, 2  ;;  %v208_v4 = vmul.f32 %v154_v43, %v86_v59  ;;  %v259_v5 = vrot.slane %v258_v56, 2 }
 0x124   :  { %v265_v6 = vrot.slane %v264_v57, 2  ;;  %v277_v8 = vrot.slane %v276_v61, 2  ;;  %v282_v9 = vadd.f32 %v281_v62, %v203_v51  ;;  %v288_v10 = vadd.f32 %v287_v63, %v204_v52  ;;  %v161_v51 = vpop.permute.xlu1 %160  ;;  %v87_v52 = vld [vmem:[#allocation3 + $0x60] sm:$0xff] }
 0x125   :  { %v248_v7 = vadd.f32 %v247_v60, %v246_v49  ;;  %v254_v14 = vadd.f32 %v253_v0, %v252_v53  ;;  %v293_v15 = vrot.slane %v205_v1, 4  ;;  %v271_v16 = vrot.slane %v270_v2, 2 }
 0x126   :  { %v299_v18 = vrot.slane %v206_v3, 4  ;;  %v311_v19 = vrot.slane %v208_v4, 4  ;;  %v260_v21 = vadd.f32 %v259_v5, %v258_v56  ;;  %v266_v22 = vadd.f32 %v265_v6, %v264_v57  ;;  %v89_v57 = vld [vmem:[#allocation3 + $0x70] sm:$0xff] }
 0x127   :  { %v215_v24 = vmul.f32 %v1417_v11, %v93_v12  ;;  %v249_v25 = vrot.slane %v248_v7, 1  ;;  %v278_v26 = vadd.f32 %v277_v8, %v276_v61  ;;  %v283_v27 = vrot.slane %v282_v9, 2  ;;  %v97_v12 = vld [vmem:[#allocation3 + $0xb0] sm:$0xff] }
 0x128   :  { %v289_v29 = vrot.slane %v288_v10, 2  ;;  %v255_v31 = vrot.slane %v254_v14, 1  ;;  %v207_v32 = vmul.f32 %v154_v43, %v85_v17  ;;  %v294_v33 = vadd.f32 %v293_v15, %v205_v1  ;;  %v88_v1 = vld [vmem:[#allocation3 + $0x68] sm:$0xff] }
 0x129   :  { %v217_v34 = vmul.f32 %v1417_v11, %v95_v20  ;;  %v1421_v35 = vadd.f32 %v271_v16, %v270_v2  ;;  %v300_v36 = vadd.f32 %v299_v18, %v206_v3  ;;  %v312_v37 = vadd.f32 %v311_v19, %v208_v4  ;;  %v92_v2 = vld [vmem:[#allocation3 + $0x88] sm:$0xff]  ;;  %v1438_v20 = vpop.eup %1269 }
 0x12a   :  { %v216_v28 = vmul.f32 %v1417_v11, %v94_v23  ;;  %v261_v38 = vrot.slane %v260_v21, 1  ;;  %v267_v39 = vrot.slane %v266_v22, 1  ;;  %v218_v41 = vmul.f32 %v1417_v11, %v96_v30 }
 0x12b   :  { %1710 = vst [vmem:[#allocation13_spill] sm:$0xff] %v1421_v35  ;;  %v353_v42 = vrot.slane %v215_v24, 4  ;;  %v1425_v44 = vadd.f32 %v249_v25, %v248_v7  ;;  %v279_v45 = vrot.slane %v278_v26, 1  ;;  %v284_v46 = vadd.f32 %v283_v27, %v282_v9  ;;  %v90_v7 = vld [vmem:[#allocation3 + $0x78] sm:$0xff] }
 0x12c   :  { %v290_v43 = vadd.f32 %v289_v29, %v288_v10  ;;  %v1427_v47 = vadd.f32 %v255_v31, %v254_v14  ;;  %v295_v48 = vrot.slane %v294_v33, 2  ;;  %v305_v49 = vrot.slane %v207_v32, 4  ;;  %v91_v29 = vld [vmem:[#allocation3 + $0x80] sm:$0xff] }
 0x12d   :  { %v365_v50 = vrot.slane %v217_v34, 4  ;;  %v301_v53 = vrot.slane %v300_v36, 2  ;;  %v313_v54 = vrot.slane %v312_v37, 2  ;;  %v220_v55 = vmul.f32 %v1417_v11, %v98_v40 }
 0x12e   :  { %v359_v56 = vrot.slane %v216_v28, 4  ;;  %v1430_v58 = vadd.f32 %v261_v38, %v260_v21  ;;  %v1432_v59 = vadd.f32 %v267_v39, %v266_v22  ;;  %v354_v60 = vadd.f32 %v353_v42, %v215_v24 }
 0x12f   :  { %v371_v61 = vrot.slane %v218_v41, 4  ;;  %v1434_v62 = vadd.f32 %v279_v45, %v278_v26  ;;  %v285_v63 = vrot.slane %v284_v46, 1  ;;  %v291_v0 = vrot.slane %v290_v43, 1 }
 0x130   :  { %v209_v3 = vmul.f32 %v161_v51, %v87_v52  ;;  %v296_v4 = vadd.f32 %v295_v48, %v294_v33  ;;  %v1436_v5 = vadd.f32 %v305_v49, %v207_v32  ;;  %v366_v6 = vadd.f32 %v365_v50, %v217_v34  ;;  %v175_v48 = vpop.permute.xlu0 %174  ;;  %v99_v49 = vld [vmem:[#allocation3 + $0xc0] sm:$0xff] }
 0x131   :  { %v211_v8 = vmul.f32 %v161_v51, %v89_v57  ;;  %v302_v9 = vadd.f32 %v301_v53, %v300_v36  ;;  %v314_v10 = vadd.f32 %v313_v54, %v312_v37  ;;  %v360_v14 = vadd.f32 %v359_v56, %v216_v28 }
 0x132   :  { %v383_v15 = vrot.slane %v220_v55, 4  ;;  %v355_v16 = vrot.slane %v354_v60, 2  ;;  %v372_v17 = vadd.f32 %v371_v61, %v218_v41  ;;  %v210_v18 = vmul.f32 %v161_v51, %v88_v1  ;;  %v101_v61 = vld [vmem:[#allocation3 + $0xd0] sm:$0xff] }
 0x133   :  { %v214_v19 = vmul.f32 %v161_v51, %v92_v2  ;;  %v1440_v21 = vadd.f32 %v285_v63, %v284_v46  ;;  %v1442_v22 = vadd.f32 %v291_v0, %v290_v43  ;;  %v212_v23 = vmul.f32 %v161_v51, %v90_v7  ;;  %v102_v63 = vld [vmem:[#allocation3 + $0xd8] sm:$0xff] }
 0x134   :  { %v317_v24 = vrot.slane %v209_v3, 4  ;;  %v297_v25 = vrot.slane %v296_v4, 1  ;;  %v219_v26 = vmul.f32 %v1417_v11, %v97_v12  ;;  %v367_v27 = vrot.slane %v366_v6, 2  ;;  %v103_v12 = vld [vmem:[#allocation3 + $0xe0] sm:$0xff] }
 0x135   :  { %v329_v30 = vrot.slane %v211_v8, 4  ;;  %v303_v31 = vrot.slane %v302_v9, 1  ;;  %v315_v32 = vrot.slane %v314_v10, 1  ;;  %v361_v33 = vrot.slane %v360_v14, 2 }
 0x136   :  { %v384_v34 = vadd.f32 %v383_v15, %v220_v55  ;;  %v356_v36 = vadd.f32 %v355_v16, %v354_v60  ;;  %v373_v37 = vrot.slane %v372_v17, 2  ;;  %v323_v28 = vrot.slane %v210_v18, 4  ;;  %v100_v60 = vld [vmem:[#allocation3 + $0xc8] sm:$0xff] }
 0x137   :  { %v347_v38 = vrot.slane %v214_v19, 4  ;;  %v213_v40 = vmul.f32 %v161_v51, %v91_v29  ;;  %v318_v41 = vadd.f32 %v317_v24, %v209_v3  ;;  %v335_v42 = vrot.slane %v212_v23, 4  ;;  %v104_v3 = vld [vmem:[#allocation3 + $0xe8] sm:$0xff] }
 0x138   :  { %v368_v45 = vadd.f32 %v367_v27, %v366_v6  ;;  %v377_v46 = vrot.slane %v219_v26, 4  ;;  %v330_v43 = vadd.f32 %v329_v30, %v211_v8  ;;  %v1446_v50 = vadd.f32 %v297_v25, %v296_v4  ;;  %v1462_v30 = vpop.permute.xlu1 %181 }
 0x139   :  { %v348_v11 = vadd.f32 %v347_v38, %v214_v19  ;;  %v1448_v52 = vadd.f32 %v303_v31, %v302_v9  ;;  %v1450_v53 = vadd.f32 %v315_v32, %v314_v10  ;;  %v385_v54 = vrot.slane %v384_v34, 2 }
 0x13a   :  { %v357_v55 = vrot.slane %v356_v36, 1  ;;  %v1452_v56 = vadd.f32 %v361_v33, %v360_v14  ;;  %v1454_v57 = vadd.f32 %v373_v37, %v372_v17  ;;  %v324_v51 = vadd.f32 %v323_v28, %v210_v18  ;;  %v107_v37 = vld [vmem:[#allocation3 + $0x100] sm:$0xff] }
 0x13b   :  { %v319_v0 = vrot.slane %v318_v41, 2  ;;  %v336_v1 = vadd.f32 %v335_v42, %v212_v23  ;;  %v341_v2 = vrot.slane %v213_v40, 4  ;;  %v221_v4 = vmul.f32 %v175_v48, %v99_v49 }
 0x13c   :  { %v369_v6 = vrot.slane %v368_v45, 1  ;;  %v1456_v7 = vadd.f32 %v377_v46, %v219_v26  ;;  %v331_v8 = vrot.slane %v330_v43, 2  ;;  %v349_v9 = vrot.slane %v348_v11, 2  ;;  %v105_v26 = vld [vmem:[#allocation3 + $0xf0] sm:$0xff] }
 0x13d   :  { %v386_v10 = vadd.f32 %v385_v54, %v384_v34  ;;  %v222_v14 = vmul.f32 %v175_v48, %v100_v60  ;;  %v223_v15 = vmul.f32 %v175_v48, %v101_v61  ;;  %v224_v16 = vmul.f32 %v175_v48, %v102_v63 }
 0x13e   :  { %1711 = vst [vmem:[#allocation14_spill] sm:$0xff] %v1456_v7  ;;  %v1458_v17 = vadd.f32 %v357_v55, %v356_v36  ;;  %v325_v18 = vrot.slane %v324_v51, 2  ;;  %v226_v19 = vmul.f32 %v175_v48, %v104_v3  ;;  %v389_v24 = vrot.slane %v221_v4, 4  ;;  %v106_v3 = vld [vmem:[#allocation3 + $0xf8] sm:$0xff] }
 0x13f   :  { %v320_v25 = vadd.f32 %v319_v0, %v318_v41  ;;  %v337_v23 = vrot.slane %v336_v1, 2  ;;  %v1460_v27 = vadd.f32 %v341_v2, %v213_v40  ;;  %v401_v29 = vrot.slane %v223_v15, 4  ;;  %v110_v40 = vld [vmem:[#allocation3 + $0x118] sm:$0xff] }
 0x140   :  { %v332_v31 = vadd.f32 %v331_v8, %v330_v43  ;;  %v350_v32 = vadd.f32 %v349_v9, %v348_v11  ;;  %v225_v33 = vmul.f32 %v175_v48, %v103_v12  ;;  %v419_v34 = vrot.slane %v226_v19, 4  ;;  %v108_v9 = vld [vmem:[#allocation3 + $0x108] sm:$0xff] }
 0x141   :  { %1712 = vst [vmem:[#allocation15_spill] sm:$0xff] %v1460_v27  ;;  %v1464_v28 = vadd.f32 %v369_v6, %v368_v45  ;;  %v387_v36 = vrot.slane %v386_v10, 1  ;;  %v395_v38 = vrot.slane %v222_v14, 4  ;;  %v407_v42 = vrot.slane %v224_v16, 4 }
 0x142   :  { %v1466_v46 = vadd.f32 %v325_v18, %v324_v51  ;;  %v390_v41 = vadd.f32 %v389_v24, %v221_v4  ;;  %v402_v49 = vadd.f32 %v401_v29, %v223_v15  ;;  %v227_v54 = vmul.f32 %v1462_v30, %v105_v26  ;;  %v1484_v24 = vpop.permute.xlu0 %188 }
 0x143   :  { %v321_v55 = vrot.slane %v320_v25, 1  ;;  %v1469_v60 = vadd.f32 %v337_v23, %v336_v1  ;;  %v420_v43 = vadd.f32 %v419_v34, %v226_v19  ;;  %v229_v11 = vmul.f32 %v1462_v30, %v107_v37  ;;  %v113_v34 = vld [vmem:[#allocation3 + $0x130] sm:$0xff] }
 0x144   :  { %v333_v48 = vrot.slane %v332_v31, 1  ;;  %v351_v61 = vrot.slane %v350_v32, 1  ;;  %v413_v63 = vrot.slane %v225_v33, 4  ;;  %v1473_v0 = vadd.f32 %v387_v36, %v386_v10 }
 0x145   :  { %v1475_v51 = vadd.f32 %v395_v38, %v222_v14  ;;  %v1477_v2 = vadd.f32 %v407_v42, %v224_v16  ;;  %v232_v4 = vmul.f32 %v1462_v30, %v110_v40  ;;  %v391_v6 = vrot.slane %v390_v41, 2  ;;  %v111_v14 = vld [vmem:[#allocation3 + $0x120] sm:$0xff]  ;;  %v112_v42 = vld [vmem:[#allocation3 + $0x128] sm:$0xff]  ;;  %v114_v40 = vld [vmem:[#allocation3 + $0x138] sm:$0xff] }
 0x146   :  { %1713 = vst [vmem:[#allocation16_spill] sm:$0xff] %v1473_v0  ;;  %v403_v8 = vrot.slane %v402_v49, 2  ;;  %v425_v12 = vrot.slane %v227_v54, 4  ;;  %v1481_v15 = vadd.f32 %v321_v55, %v320_v25  ;;  %v421_v19 = vrot.slane %v420_v43, 2  ;;  %v116_v55 = vld [vmem:[#allocation3 + $0x148] sm:$0xff] }
 0x147   :  { %v437_v10 = vrot.slane %v229_v11, 4  ;;  %v1486_v16 = vadd.f32 %v333_v48, %v332_v31  ;;  %v1488_v23 = vadd.f32 %v351_v61, %v350_v32  ;;  %v1490_v29 = vadd.f32 %v413_v63, %v225_v33  ;;  %v109_v32 = vld [vmem:[#allocation3 + $0x110] sm:$0xff] }
 0x148   :  { %v228_v26 = vmul.f32 %v1462_v30, %v106_v3  ;;  %v230_v36 = vmul.f32 %v1462_v30, %v108_v9  ;;  %v455_v38 = vrot.slane %v232_v4, 4  ;;  %v1496_v13 = vadd.f32 %v391_v6, %v390_v41 }
 0x149   :  { %1714 = vst [vmem:[#allocation17_spill] sm:$0xff] %v1490_v29  ;;  %v1498_v31 = vadd.f32 %v403_v8, %v402_v49  ;;  %v426_v33 = vadd.f32 %v425_v12, %v227_v54  ;;  %v233_v48 = vmul.f32 %v1484_v24, %v111_v14  ;;  %v1501_v61 = vadd.f32 %v421_v19, %v420_v43  ;;  %v196_v19 = vpop.permute.xlu1 %195  ;;  %v122_v43 = vld [vmem:[#allocation3 + $0x178] sm:$0xff] }
 0x14a   :  { %v438_v63 = vadd.f32 %v437_v10, %v229_v11  ;;  %v456_v3 = vadd.f32 %v455_v38, %v232_v4  ;;  %v235_v45 = vmul.f32 %v1484_v24, %v113_v34  ;;  %v431_v39 = vrot.slane %v228_v26, 4  ;;  %v117_v10 = vld [vmem:[#allocation3 + $0x150] sm:$0xff] }
 0x14b   :  { %v234_v9 = vmul.f32 %v1484_v24, %v112_v42  ;;  %v236_v25 = vmul.f32 %v1484_v24, %v114_v40  ;;  %v238_v41 = vmul.f32 %v1484_v24, %v116_v55  ;;  %v1508_v49 = vmul.f32 %v1462_v30, %v109_v32  ;;  %v118_v40 = vld [vmem:[#allocation3 + $0x158] sm:$0xff]  ;;  %v119_v55 = vld [vmem:[#allocation3 + $0x160] sm:$0xff] }
 0x14c   :  { %v443_v6 = vrot.slane %v230_v36, 4  ;;  %v461_v54 = vrot.slane %v233_v48, 4  ;;  %v473_v8 = vrot.slane %v235_v45, 4  ;;  %v427_v4 = vrot.slane %v426_v33, 2  ;;  %v115_v32 = vld [vmem:[#allocation3 + $0x140] sm:$0xff] }
 0x14d   :  { %1715 = vst [vmem:[#allocation18_spill] sm:$0xff] %v1508_v49  ;;  %v491_v12 = vrot.slane %v238_v41, 4  ;;  %v439_v34 = vrot.slane %v438_v63, 2  ;;  %v457_v38 = vrot.slane %v456_v3, 2  ;;  %v432_v30 = vadd.f32 %v431_v39, %v228_v26 }
 0x14e   :  { %v462_v42 = vadd.f32 %v461_v54, %v233_v48  ;;  %v467_v18 = vrot.slane %v234_v9, 4  ;;  %v474_v37 = vadd.f32 %v473_v8, %v235_v45  ;;  %v479_v1 = vrot.slane %v236_v25, 4  ;;  %v120_v54 = vld [vmem:[#allocation3 + $0x168] sm:$0xff] }
 0x14f   :  { %v1513_v11 = vadd.f32 %v443_v6, %v230_v36  ;;  %v492_v29 = vadd.f32 %v491_v12, %v238_v41  ;;  %v239_v27 = vmul.f32 %v196_v19, %v117_v10  ;;  %v1516_v14 = vadd.f32 %v427_v4, %v426_v33  ;;  %v121_v33 = vld [vmem:[#allocation3 + $0x170] sm:$0xff] }
 0x150   :  { %v463_v48 = vrot.slane %v462_v42, 2  ;;  %v240_v7 = vmul.f32 %v196_v19, %v118_v40  ;;  %v241_v0 = vmul.f32 %v196_v19, %v119_v55  ;;  %v1518_v39 = vadd.f32 %v439_v34, %v438_v63 }
 0x151   :  { %v1520_v45 = vadd.f32 %v457_v38, %v456_v3  ;;  %v1523_v26 = vmul.f32 %v1484_v24, %v115_v32  ;;  %v244_v36 = vmul.f32 %v196_v19, %v122_v43  ;;  %v468_v6 = vadd.f32 %v467_v18, %v234_v9 }
 0x152   :  { %v475_v8 = vrot.slane %v474_v37, 2  ;;  %v480_v41 = vadd.f32 %v479_v1, %v236_v25  ;;  %v497_v12 = vrot.slane %v239_v27, 4  ;;  %v493_v10 = vrot.slane %v492_v29, 2 }
 0x153   :  { %v242_v4 = vmul.f32 %v196_v19, %v120_v54  ;;  %v509_v35 = vrot.slane %v241_v0, 4  ;;  %v527_v49 = vrot.slane %v244_v36, 4  ;;  %v1525_v40 = vadd.f32 %v463_v48, %v462_v42 }
 0x154   :  { %v1527_v63 = vadd.f32 %v497_v12, %v239_v27  ;;  %v503_v3 = vrot.slane %v240_v7, 4  ;;  %v363_v34 = vrot.slane %v1452_v56, 1  ;;  %v1716_v1 = vrot.slane %v1466_v46, 1 }
 0x155   :  { %v1530_v24 = vadd.f32 %v509_v35, %v241_v0  ;;  %v1532_v43 = vadd.f32 %v527_v49, %v244_v36  ;;  %v1717_v25 = vrot.slane %v1475_v51, 2  ;;  %v1540_v38 = vadd.f32 %v475_v8, %v474_v37 }
 0x156   :  { %v328_v18 = vadd.f32 %v1716_v1, %v1466_v46  ;;  %v1542_v27 = vmul.f32 %v196_v19, %v121_v33  ;;  %v364_v42 = vadd.f32 %v363_v34, %v1452_v56  ;;  %v433_v55 = vrot.slane %v432_v30, 2 }
 0x157   :  { %v398_v9 = vadd.f32 %v1717_v25, %v1475_v51  ;;  %v1545_v35 = vadd.f32 %v493_v10, %v492_v29  ;;  %v499_v0 = vrot.slane %v1527_v63, 2  ;;  %v515_v49 = vrot.slane %v242_v4, 4 }
 0x158   :  { %v434_v46 = vadd.f32 %v433_v55, %v432_v30  ;;  %v469_v48 = vrot.slane %v468_v6, 2  ;;  %v504_v54 = vadd.f32 %v503_v3, %v240_v7  ;;  %v595_v51 = vsel %vm581_vm2, %v1442_v22, %v1427_v47 }
 0x159   :  { %v399_v32 = vrot.slane %v398_v9, 1  ;;  %v511_v37 = vrot.slane %v1530_v24, 2  ;;  %v529_v19 = vrot.slane %v1532_v43, 2  ;;  %v596_v29 = vsel %vm583_vm3, %v328_v18, %v595_v51 }
 0x15a   :  { %v435_v36 = vrot.slane %v434_v46, 1  ;;  %v470_v8 = vadd.f32 %v469_v48, %v468_v6  ;;  %v505_v12 = vrot.slane %v504_v54, 2  ;;  %v597_v10 = vsel %vm585_vm4, %v364_v42, %v596_v29 }
 0x15b   :  { %v400_v56 = vadd.f32 %v399_v32, %v398_v9  ;;  %v1718_v7 = vrot.slane %v1469_v60, 1  ;;  %v375_v47 = vrot.slane %v1454_v57, 1  ;;  %v1719_v22 = vrot.slane %v1477_v2, 2 }
 0x15c   :  { %v436_v34 = vadd.f32 %v435_v36, %v434_v46  ;;  %v471_v1 = vrot.slane %v470_v8, 1  ;;  %v506_v18 = vadd.f32 %v505_v12, %v504_v54  ;;  %v445_v6 = vrot.slane %v1513_v11, 2 }
 0x15d   :  { %v598_v30 = vsel %vm587_vm5, %v400_v56, %v597_v10  ;;  %v340_v33 = vadd.f32 %v1718_v7, %v1469_v60  ;;  %v410_v3 = vadd.f32 %v1719_v22, %v1477_v2  ;;  %v376_v25 = vadd.f32 %v375_v47, %v1454_v57 }
 0x15e   :  { %v481_v42 = vrot.slane %v480_v41, 2  ;;  %v516_v55 = vadd.f32 %v515_v49, %v242_v4  ;;  %v472_v32 = vadd.f32 %v471_v1, %v470_v8  ;;  %v507_v48 = vrot.slane %v506_v18, 1 }
 0x15f   :  { %v411_v9 = vrot.slane %v410_v3, 1  ;;  %v599_v60 = vsel %vm589_vm6, %v436_v34, %v598_v30  ;;  %v446_v51 = vadd.f32 %v445_v6, %v1513_v11  ;;  %v609_v2 = vsel %vm581_vm2, %v1448_v52, %v1432_v59 }
 0x160   :  { %v482_v29 = vadd.f32 %v481_v42, %v480_v41  ;;  %v517_v10 = vrot.slane %v516_v55, 2  ;;  %v508_v46 = vadd.f32 %v507_v48, %v506_v18  ;;  %v600_v54 = vsel %vm591_vm7, %v472_v32, %v599_v60 }
 0x161   :  { %v412_v56 = vadd.f32 %v411_v9, %v410_v3  ;;  %v447_v57 = vrot.slane %v446_v51, 1  ;;  %v610_v36 = vsel %vm583_vm3, %v340_v33, %v609_v2  ;;  %v1720_v11 = vrot.slane %v1496_v13, 1 }
 0x162   :  { %v483_v4 = vrot.slane %v482_v29, 1  ;;  %v518_v49 = vadd.f32 %v517_v10, %v516_v55  ;;  %v611_v8 = vsel %vm585_vm4, %v376_v25, %v610_v36  ;;  %v601_v41 = vsel %vm593_vm8, %v508_v46, %v600_v54  ;;  %v766_v36 = vld [vmem:[#allocation6 + $0x2f0] sm:$0xff] }
 0x163   :  { %v394_v12 = vadd.f32 %v1720_v11, %v1496_v13  ;;  %v448_v30 = vadd.f32 %v447_v57, %v446_v51  ;;  %v612_v7 = vsel %vm587_vm5, %v412_v56, %v611_v8  ;;  %v429_v59 = vrot.slane %v1516_v14, 1  ;;  %v751_v57 = vld [vmem:[#allocation6 + $0x278] sm:$0xff] }
 0x164   :  { %v667_v52 = vmul.f32 %v1438_v20, %v601_v41  ;;  %v484_v47 = vadd.f32 %v483_v4, %v482_v29  ;;  %v519_v22 = vrot.slane %v518_v49, 1  ;;  %v465_v33 = vrot.slane %v1525_v40, 1 }
 0x165   :  { %v613_v3 = vsel %vm589_vm6, %v448_v30, %v612_v7  ;;  %v430_v34 = vadd.f32 %v429_v59, %v1516_v14  ;;  %v500_v1 = vadd.f32 %v499_v0, %v1527_v63  ;;  %v582_v13 = vsel %vm581_vm2, %v1440_v21, %v1425_v44  ;;  %v765_v30 = vld [vmem:[#allocation6 + $0x2e8] sm:$0xff]  ;;  %v1725_v7 = vld [vmem:[#allocation14_spill] sm:$0xff] }
 0x166   :  { %839 = vmatprep.mubr.f32.mxu0 %v667_v52  ;;  %v520_v18 = vadd.f32 %v519_v22, %v518_v49  ;;  %v614_v6 = vsel %vm591_vm7, %v484_v47, %v613_v3  ;;  %v466_v25 = vadd.f32 %v465_v33, %v1525_v40  ;;  %v584_v9 = vsel %vm583_vm3, %v1481_v15, %v582_v13  ;;  %v1726_v52 = vld [vmem:[#allocation18_spill] sm:$0xff]  ;;  %v764_v13 = vld [vmem:[#allocation6 + $0x2e0] sm:$0xff] }
 0x167   :  { %v501_v42 = vrot.slane %v500_v1, 1  ;;  %v586_v55 = vsel %vm585_vm4, %v1458_v17, %v584_v9  ;;  %v1721_v14 = vrot.slane %v1498_v31, 1  ;;  %v441_v0 = vrot.slane %v1518_v39, 1  ;;  %v1730_v9 = vld [vmem:[#allocation17_spill] sm:$0xff] }
 0x168   :  { %v615_v44 = vsel %vm593_vm8, %v520_v18, %v614_v6  ;;  %v588_v21 = vsel %vm587_vm5, %v394_v12, %v586_v55  ;;  %v477_v32 = vrot.slane %v1540_v38, 1  ;;  %v512_v40 = vadd.f32 %v511_v37, %v1530_v24  ;;  %v750_v12 = vld [vmem:[#allocation6 + $0x270] sm:$0xff]  ;;  %v1728_v18 = vld [vmem:[#allocation15_spill] sm:$0xff] }
 0x169   :  { %v406_v63 = vadd.f32 %v1721_v14, %v1498_v31  ;;  %v669_v15 = vmul.f32 %v1438_v20, %v615_v44  ;;  %v502_v48 = vadd.f32 %v501_v42, %v500_v1  ;;  %v590_v60 = vsel %vm589_vm6, %v430_v34, %v588_v21  ;;  %v763_v44 = vld [vmem:[#allocation6 + $0x2d8] sm:$0xff]  ;;  %v1731_v21 = vld [vmem:[#allocation13_spill] sm:$0xff] }
 0x16a   :  { %v442_v17 = vadd.f32 %v441_v0, %v1518_v39  ;;  %v592_v51 = vsel %vm591_vm7, %v466_v25, %v590_v60  ;;  %v478_v31 = vadd.f32 %v477_v32, %v1540_v38  ;;  %v513_v56 = vrot.slane %v512_v40, 1 }
 0x16b   :  { %v602_v29 = vsel %vm581_vm2, %v1446_v50, %v1430_v58  ;;  %909 = vmatprep.mubr.f32.mxu1 %v669_v15  ;;  %v594_v10 = vsel %vm593_vm8, %v502_v48, %v592_v51  ;;  %v1722_v37 = vrot.slane %v1501_v61, 1  ;;  %v459_v39 = vrot.slane %v1520_v45, 1  ;;  %v747_v15 = vld [vmem:[#allocation6 + $0x258] sm:$0xff]  ;;  %v762_v51 = vld [vmem:[#allocation6 + $0x2d0] sm:$0xff] }
 0x16c   :  { %v603_v24 = vsel %vm583_vm3, %v1486_v16, %v602_v29  ;;  %v666_v46 = vmul.f32 %v1438_v20, %v594_v10  ;;  %v514_v38 = vadd.f32 %v513_v56, %v512_v40  ;;  %v495_v58 = vrot.slane %v1545_v35, 1  ;;  %v746_v10 = vld [vmem:[#allocation6 + $0x250] sm:$0xff] }
 0x16d   :  { %v424_v2 = vadd.f32 %v1722_v37, %v1501_v61  ;;  %v604_v54 = vsel %vm585_vm4, %v1464_v28, %v603_v24  ;;  %v460_v16 = vadd.f32 %v459_v39, %v1520_v45  ;;  %v530_v61 = vadd.f32 %v529_v19, %v1532_v43  ;;  %v761_v24 = vld [vmem:[#allocation6 + $0x2c8] sm:$0xff] }
 0x16e   :  { %v605_v50 = vsel %vm587_vm5, %v406_v63, %v604_v54  ;;  %v623_v4 = vsel %vm581_vm2, %v1450_v53, %v1434_v62  ;;  %v485_v49 = vrot.slane %v1523_v26, 4  ;;  %840 = vmatmul.mubr.f32.vlgmr.msra.gmra.mxu0 %v666_v46  ;;  %v496_v8 = vadd.f32 %v495_v58, %v1545_v35  ;;  %v1724_v62 = vld [vmem:[#allocation16_spill] sm:$0xff] }
 0x16f   :  { %v606_v28 = vsel %vm589_vm6, %v442_v17, %v605_v50  ;;  %v624_v11 = vsel %vm583_vm3, %v1488_v23, %v623_v4  ;;  %v1723_v45 = vrot.slane %v1436_v5, 2  ;;  %1170 = vmatpush3.msra.mxu0 %v751_v57  ;;  %v531_v19 = vrot.slane %v530_v61, 1  ;;  %v748_v63 = vld [vmem:[#allocation6 + $0x260] sm:$0xff] }
 0x170   :  { %v607_v43 = vsel %vm591_vm7, %v478_v31, %v606_v28  ;;  %v625_v53 = vsel %vm585_vm4, %v1724_v62, %v624_v11  ;;  %v379_v59 = vrot.slane %v1725_v7, 2  ;;  %v1727_v35 = vrot.slane %v1726_v52, 4  ;;  %1171 = vmatprep.subr.mxu0 %v766_v36  ;;  %v744_v36 = vld [vmem:[#allocation6 + $0x240] sm:$0xff]  ;;  %v741_v62 = vld [vmem:[#allocation6 + $0x228] sm:$0xff] }
 0x171   :  { %v308_v41 = vadd.f32 %v1723_v45, %v1436_v5  ;;  %v608_v23 = vsel %vm593_vm8, %v514_v38, %v607_v43  ;;  %v626_v22 = vsel %vm587_vm5, %v424_v2, %v625_v53  ;;  %v749_v5 = vld [vmem:[#allocation6 + $0x268] sm:$0xff]  ;;  %v521_v33 = vrot.slane %v1542_v27, 4  ;;  %1172 = vmatpush3.msra.mxu0 %v750_v12 }
 0x172   :  { %v450_v47 = vadd.f32 %v1727_v35, %v1726_v52  ;;  %v668_v3 = vmul.f32 %v1438_v20, %v608_v23  ;;  %v532_v34 = vadd.f32 %v531_v19, %v530_v61  ;;  %v627_v1 = vsel %vm589_vm6, %v460_v16, %v626_v22  ;;  %1173 = vmatprep.subr.mxu0 %v765_v30  ;;  %v745_v2 = vld [vmem:[#allocation6 + $0x248] sm:$0xff]  ;;  %v759_v16 = vld [vmem:[#allocation6 + $0x2b8] sm:$0xff]  ;;  %v756_v30 = vld [vmem:[#allocation6 + $0x2a0] sm:$0xff] }
 0x173   :  { %v1729_v6 = vrot.slane %v1728_v18, 2  ;;  %v415_v42 = vrot.slane %v1730_v9, 2  ;;  %v486_v55 = vadd.f32 %v485_v49, %v1523_v26  ;;  %v628_v14 = vsel %vm591_vm7, %v496_v8, %v627_v1  ;;  %1174 = vmatpush3.msra.mxu0 %v749_v5  ;;  %v743_v61 = vld [vmem:[#allocation6 + $0x238] sm:$0xff]  ;;  %v758_v8 = vld [vmem:[#allocation6 + $0x2b0] sm:$0xff]  ;;  %v757_v19 = vld [vmem:[#allocation6 + $0x2a8] sm:$0xff] }
 0x174   :  { %910 = vmatmul.mubr.f32.vlgmr.msra.gmra.mxu1 %v668_v3  ;;  %v629_v0 = vsel %vm593_vm8, %v532_v34, %v628_v14  ;;  %v273_v32 = vrot.slane %v1731_v21, 1  ;;  %1175 = vmatprep.subr.mxu0 %v764_v13  ;;  %v309_v48 = vrot.slane %v308_v41, 1  ;;  %v380_v60 = vadd.f32 %v379_v59, %v1725_v7  ;;  %v740_v35 = vld [vmem:[#allocation6 + $0x220] sm:$0xff]  ;;  %v755_v23 = vld [vmem:[#allocation6 + $0x298] sm:$0xff]  ;;  %v754_v5 = vld [vmem:[#allocation6 + $0x290] sm:$0xff] }
 0x175   :  { %v344_v25 = vadd.f32 %v1729_v6, %v1728_v18  ;;  %v671_v40 = vmul.f32 %v1438_v20, %v629_v0  ;;  %v451_v17 = vrot.slane %v450_v47, 2  ;;  %v522_v26 = vadd.f32 %v521_v33, %v1542_v27  ;;  %1176 = vmatpush3.msra.mxu0 %v748_v63  ;;  %v760_v27 = vld [vmem:[#allocation6 + $0x2c0] sm:$0xff]  ;;  %v739_v22 = vld [vmem:[#allocation6 + $0x218] sm:$0xff]  ;;  %v738_v34 = vld [vmem:[#allocation6 + $0x210] sm:$0xff] }
 0x176   :  { %v416_v56 = vadd.f32 %v415_v42, %v1730_v9  ;;  %v487_v29 = vrot.slane %v486_v55, 2  ;;  %1177 = vmatprep.subr.mxu0 %v763_v44  ;;  %v274_v37 = vadd.f32 %v273_v32, %v1731_v21  ;;  %v310_v39 = vadd.f32 %v309_v48, %v308_v41  ;;  %v742_v41 = vld [vmem:[#allocation6 + $0x230] sm:$0xff]  ;;  %v753_v13 = vld [vmem:[#allocation6 + $0x288] sm:$0xff]  ;;  %v752_v6 = vld [vmem:[#allocation6 + $0x280] sm:$0xff] }
 0x177   :  { %v345_v31 = vrot.slane %v344_v25, 1  ;;  %979 = vmatprep.mubr.f32.mxu0 %v671_v40  ;;  %1178 = vmatpush3.msra.mxu0 %v747_v15  ;;  %v381_v46 = vrot.slane %v380_v60, 1  ;;  %v452_v38 = vadd.f32 %v451_v17, %v450_v47  ;;  %v523_v54 = vrot.slane %v522_v26, 2  ;;  %v737_v18 = vld [vmem:[#allocation6 + $0x208] sm:$0xff]  ;;  %v736_v9 = vld [vmem:[#allocation6 + $0x200] sm:$0xff]  ;;  %v1000_v14 = vld [vmem:[#allocation8 + $0x70] sm:$0xff] }
 0x178   :  { %1179 = vmatprep.subr.mxu0 %v762_v51  ;;  %v417_v58 = vrot.slane %v416_v56, 1  ;;  %v488_v50 = vadd.f32 %v487_v29, %v486_v55  ;;  %v616_v11 = vsel %vm581_vm2, %v310_v39, %v274_v37  ;;  %v1001_v55 = vld [vmem:[#allocation8 + $0x78] sm:$0xff]  ;;  %v1732_v63 = vmov 0.0   ;;  %v999_v0 = vld [vmem:[#allocation8 + $0x68] sm:$0xff]  ;;  %v998_v44 = vld [vmem:[#allocation8 + $0x60] sm:$0xff] }
 0x179   :  { %1180 = vmatpush3.msra.mxu0 %v746_v10  ;;  %v346_v57 = vadd.f32 %v345_v31, %v344_v25  ;;  %v382_v4 = vadd.f32 %v381_v46, %v380_v60  ;;  %v453_v49 = vrot.slane %v452_v38, 1  ;;  %v524_v28 = vadd.f32 %v523_v54, %v522_v26  ;;  %1222 = vmatpush3.msra.mxu1 %v1001_v55  ;;  %v997_v21 = vld [vmem:[#allocation8 + $0x58] sm:$0xff]  ;;  %v995_v32 = vld [vmem:[#allocation8 + $0x48] sm:$0xff]  ;;  %v994_v40 = vld [vmem:[#allocation8 + $0x40] sm:$0xff] }
 0x17a   :  { %1181 = vmatprep.subr.mxu0 %v761_v24  ;;  %v418_v12 = vadd.f32 %v417_v58, %v416_v56  ;;  %v489_v45 = vrot.slane %v488_v50, 1  ;;  %1223 = vmatprep.subr.mxu1 %v1732_v63  ;;  %v993_v15 = vld [vmem:[#allocation8 + $0x38] sm:$0xff]  ;;  %v992_v48 = vld [vmem:[#allocation8 + $0x30] sm:$0xff]  ;;  %v991_v60 = vld [vmem:[#allocation8 + $0x28] sm:$0xff] }
 0x17b   :  { %1182 = vmatpush3.msra.mxu0 %v745_v2  ;;  %v617_v43 = vsel %vm583_vm3, %v346_v57, %v616_v11  ;;  %v525_v53 = vrot.slane %v524_v28, 1  ;;  %v454_v7 = vadd.f32 %v453_v49, %v452_v38  ;;  %1224 = vmatpush3.msra.mxu1 %v1000_v14  ;;  %v990_v17 = vld [vmem:[#allocation8 + $0x20] sm:$0xff]  ;;  %v989_v26 = vld [vmem:[#allocation8 + $0x18] sm:$0xff]  ;;  %v988_v51 = vld [vmem:[#allocation8 + $0x10] sm:$0xff] }
 0x17c   :  { %1183 = vmatprep.subr.mxu0 %v760_v27  ;;  %v618_v59 = vsel %vm585_vm4, %v382_v4, %v617_v43  ;;  %v490_v52 = vadd.f32 %v489_v45, %v488_v50  ;;  %1225 = vmatprep.subr.mxu1 %v1732_v63  ;;  %v987_v31 = vld [vmem:[#allocation8 + $0x8] sm:$0xff]  ;;  %v986_v56 = vld [vmem:[#allocation8] sm:$0xff] }
 0x17d   :  { %1184 = vmatpush3.msra.mxu0 %v744_v36  ;;  %v619_v47 = vsel %vm587_vm5, %v418_v12, %v618_v59  ;;  %v526_v33 = vadd.f32 %v525_v53, %v524_v28  ;;  %1226 = vmatpush3.msra.mxu1 %v999_v0  ;;  %v1097_v2 = vld [vmem:[%s1697_s3] ss:$0 sm:$0xff]  ;;  %s1331_s3 = scalar_lea.vmem %s1087_s19, 128 }
 0x17e   :  { %1185 = vmatprep.subr.mxu0 %v759_v16  ;;  %v620_v3 = vsel %vm589_vm6, %v454_v7, %v619_v47  ;;  %1227 = vmatprep.subr.mxu1 %v1732_v63  ;;  %v1098_v16 = vld [vmem:[%s1699_s5] ss:$0 sm:$0xff]  ;;  %p1332_p1 = scmp.ne.s32.totalorder %s1087_s19, %s1331_s3  ;;  %p1337_p3 = scmp.lt.s32.totalorder %s1331_s3, %s1331_s3 }
 0x17f   :  { %1186 = vmatpush3.msra.mxu0 %v743_v61  ;;  %v621_v1 = vsel %vm591_vm7, %v490_v52, %v620_v3  ;;  %1228 = vmatpush3.msra.mxu1 %v998_v44 }
 0x180   :  { %1187 = vmatprep.subr.mxu0 %v758_v8  ;;  %v622_v25 = vsel %vm593_vm8, %v526_v33, %v621_v1  ;;  %1229 = vmatprep.subr.mxu1 %v1732_v63  ;;  %p1338_p4 = por %p1337_p3, %p1336_p2 }
 0x181   :  { %1188 = vmatpush3.msra.mxu0 %v742_v41  ;;  %v670_v42 = vmul.f32 %v1438_v20, %v622_v25  ;;  %v996_v20 = vld [vmem:[#allocation8 + $0x50] sm:$0xff]  ;;  %1230 = vmatpush3.msra.mxu1 %v997_v21 }
 0x182   :  { %1189 = vmatprep.subr.mxu0 %v757_v19  ;;  %1231 = vmatprep.subr.mxu1 %v1732_v63  ;;  %p1339_p5 = pnand %p1338_p4, %p1332_p1 }
 0x183   :  { %1190 = vmatpush3.msra.mxu0 %v741_v62  ;;  %1232 = vmatpush3.msra.mxu1 %v996_v20 }
 0x184   :  { %1191 = vmatprep.subr.mxu0 %v756_v30  ;;  %1233 = vmatprep.subr.mxu1 %v1732_v63 }
 0x185   :  { %1192 = vmatpush3.msra.mxu0 %v740_v35  ;;  %1234 = vmatpush3.msra.mxu1 %v995_v32 }
 0x186   :  { %1193 = vmatprep.subr.mxu0 %v755_v23  ;;  %1235 = vmatprep.subr.mxu1 %v1732_v63 }
 0x187   :  { %1194 = vmatpush3.msra.mxu0 %v739_v22  ;;  %1236 = vmatpush3.msra.mxu1 %v994_v40 }
 0x188   :  { %1195 = vmatprep.subr.mxu0 %v754_v5  ;;  %1237 = vmatprep.subr.mxu1 %v1732_v63 }
 0x189   :  { %1196 = vmatpush3.msra.mxu0 %v738_v34  ;;  %1238 = vmatpush3.msra.mxu1 %v993_v15 }
 0x18a   :  { %1197 = vmatprep.subr.mxu0 %v753_v13  ;;  %1239 = vmatprep.subr.mxu1 %v1732_v63 }
 0x18b   :  { %1198 = vmatpush3.msra.mxu0 %v737_v18  ;;  %1240 = vmatpush3.msra.mxu1 %v992_v48 }
 0x18c   :  { %1199 = vmatprep.subr.mxu0 %v752_v6  ;;  %1241 = vmatprep.subr.mxu1 %v1732_v63 }
 0x18d   :  { %1200 = vmatpush3.msra.mxu0 %v736_v9  ;;  %1242 = vmatpush3.msra.mxu1 %v991_v60 }
 0x18e   :  { %980 = vmatmul.mubr.f32.vlgmr.msra.gmra.mxu0 %v670_v42  ;;  %1243 = vmatprep.subr.mxu1 %v1732_v63 }
 0x18f   :  { %1244 = vmatpush3.msra.mxu1 %v990_v17  ;;  %1253 = vmatprep.mubr.msk.f32.mxu1 %vm1366_vm9, %v1732_v63 }
 0x190   :  { %1245 = vmatprep.subr.mxu1 %v1732_v63 }
 0x191   :  { %1246 = vmatpush3.msra.mxu1 %v989_v26 }
 0x192   :  { %1247 = vmatprep.subr.mxu1 %v1732_v63 }
 0x193   :  { %1248 = vmatpush3.msra.mxu1 %v988_v51 }
 0x194   :  { %1249 = vmatprep.subr.mxu1 %v1732_v63 }
 0x195   :  { %1250 = vmatpush3.msra.mxu1 %v987_v31 }
 0x196   :  { %1251 = vmatprep.subr.mxu1 %v1732_v63 }
 0x197   :  { %1252 = vmatpush3.msra.mxu1 %v986_v56 }
 0x22e   :  { %v1131_v29 = vpop.f32.mrf.mxu0 }
 0x230   :  { %v1132_v10 = vpop.f32.mrf.mxu0 }
 0x231   :  { %v1133_v37 = vadd.f32 %v1132_v10, %v1131_v29 }
 0x233   :  { %v842_v46 = vadd.f32 %v1133_v37, %v1097_v2 }
 0x234   :  { %v1166_v24 = vpop.f32.mrf.mxu1 }
 0x236   :  { %v1167_v39 = vpop.f32.mrf.mxu1 }
 0x237   :  { %v1168_v54 = vadd.f32 %v1167_v39, %v1166_v24 }
 0x239   :  { %v912_v57 = vadd.f32 %v1168_v54, %v842_v46 }
 0x24e   :  { %v1201_v38 = vpop.f32.mrf.mxu0 }
 0x250   :  { %v1202_v27 = vpop.f32.mrf.mxu0 }
 0x251   :  { %v1203_v58 = vadd.f32 %v1202_v27, %v1201_v38 }
 0x253   :  { %v982_v50 = vadd.f32 %v1203_v58, %v912_v57 }
 0x255   :  { %v985_v36 = vmax.f32 %v982_v50, 0.0 }
 0x257   :  { %1254 = vmatmul.mubr.f32.vlgmr.msra.gmra.mxu1 %v985_v36 }
 0x317   :  { %v1075_v61 = vpop.f32.mrf.mxu1 }
 0x318   :  { %v1076_v4 = vadd.f32 %v1098_v16, %v1075_v61 }
 0x319   :  { %v1255_v49 = vpop.f32.mrf.mxu1 }
 0x31a   :  { %1079 = vst [vmem:[#allocation9] sm:$0xff] %v1076_v4 }
 0x31b   :  { %1342 = shalt.err (!%p1339_p5)
}
 0x31c   :  { %1089 = dma.vmem_to_hbm [thread:$0]  %s1087_s19, 128, %s1700_s6, [#allocation5]  }
 0x31d   :  { %1355 = dma.done.wait [#allocation5], 128  }
 0x31e   :  { %1356 = vsyncadd [#allocation5], 4294967168 }
 0x31f   :  { %1093 = vsyncpa [#allocation4], 1 }
 0x320   :  { %1094 = vsyncpa [#allocation7], 1 }
 0x321   :  { %1095 = vsyncpa [#allocation5], 1 }

</bundles_post_ra>
